<compile_context>
chip_gen: v5e
topology: v5e:2x2
jax: 0.10.0
libtpu: 0.0.40
codegen_flags: <defaults>
</compile_context>

<pallas_src>
import functools
import math

import jax
import jax.numpy as jnp
from jax.experimental import pallas as pl
from jax.experimental.pallas import tpu as pltpu


def _round_up(n, m):
    return ((n + m - 1) // m) * m


def _vmem_capacity_bytes():
    try:
        return int(pltpu.get_tpu_info().vmem_capacity_bytes)
    except Exception:
        return 64 << 20          # conservative default (v7x per-TC VMEM)


def _const_block_spec(shape, single_buffer):
    """BlockSpec for an operand whose block index never changes (resident)."""
    index_map = lambda i: (0,) * len(shape)
    if single_buffer:
        try:
            return pl.BlockSpec(shape, index_map, pipeline_mode=pl.Buffered(1))
        except Exception:
            pass
    return pl.BlockSpec(shape, index_map)


def _mlp_kernel(*refs, num_layers, operand_dtype):
    # refs = (x_ref, w0_ref, b0_ref, w1_ref, b1_ref, ..., o_ref)
    x_ref = refs[0]
    o_ref = refs[-1]
    wb = refs[1:-1]

    h = x_ref[...]                                    # (TM, K0p) f32
    for i in range(num_layers):
        w = wb[2 * i][...]                            # (Kp, Np) already operand_dtype
        b = wb[2 * i + 1][...]                        # (1,  Np) f32
        lhs = h.astype(operand_dtype)                 # cheap: only the row tile
        h = jnp.dot(lhs, w, preferred_element_type=jnp.float32) + b
        if i < num_layers - 1:
            h = jnp.maximum(h, 0.0)
    o_ref[...] = h.astype(o_ref.dtype)


def mlp_forward_pallas(x, padded_params, *, out_dim, operand_dtype=jnp.bfloat16,
                       tm_max=512, single_buffer_weights=True):
    """Fused MLP forward: one pallas_call, weights VMEM-resident across row tiles.

    x:             (..., in_dim), feature-last.
    padded_params: list of (W_pad, b_pad); W_pad is (Kp, Np) in operand_dtype
                   (128-padded), b_pad is (1, Np) f32.  y = x @ W + b.
    """
    num_layers = len(padded_params)
    dims_pad = [padded_params[0][0].shape[0]] + [w.shape[1]
                                                 for (w, _) in padded_params]

    lead = x.shape[:-1]
    in_dim = x.shape[-1]
    M = int(math.prod(lead)) if lead else 1
    x2d = x.reshape(M, in_dim).astype(jnp.float32)
    if in_dim < dims_pad[0]:
        # Pad only the feature axis (lane density); rows stay unpadded -- the
        # last row tile may be partial and is masked by Pallas.
        x2d = jnp.pad(x2d, ((0, 0), (0, dims_pad[0] - in_dim)))

    # ---- VMEM budget & row-tile selection ----------------------------------
    weight_bytes = sum(int(w.size) * w.dtype.itemsize + int(b.size) * 4
                       for (w, b) in padded_params)
    weight_vmem = weight_bytes * (1 if single_buffer_weights else 2)
    vmem_cap = (_vmem_capacity_bytes() * 3) // 4      # headroom for Mosaic scratch

    def act_footprint(tm):
        return (2 * tm * dims_pad[0] * 4              # double-buffered input tile
                + 2 * tm * dims_pad[-1] * 4           # double-buffered output tile
                + 2 * tm * max(dims_pad) * 4)         # two live f32 intermediates

    align = 16 if jnp.dtype(operand_dtype).itemsize < 4 else 8
    tm = min(tm_max, _round_up(max(M, 1), align))
    tm = max(align, _round_up(tm, align))
    while tm > 8 and weight_vmem + act_footprint(tm) > vmem_cap:
        tm = max(8, _round_up(tm // 2, 8))
    # Force >= 2 grid steps when possible so ("parallel",) can shard row tiles
    # across v7x's two TensorCores (harmless on single-TC v5e/v6e).
    if M > 8 and pl.cdiv(M, tm) < 2:
        tm = max(8, _round_up(pl.cdiv(M, 2), 8))
    grid = (pl.cdiv(M, tm),)

    footprint = weight_vmem + act_footprint(tm)
    vmem_limit = int(min(vmem_cap, max(2 * footprint + (2 << 20), 32 << 20)))
    # TODO(synk): if the resident (bf16) weight set itself exceeds the VMEM
    # budget (very large hidden dims on v7x's 64 MiB), stream the widest layer
    # over an inner "arbitrary" grid axis instead of keeping all layers resident.

    # ---- specs ---------------------------------------------------------------
    in_specs = [pl.BlockSpec((tm, dims_pad[0]), lambda i: (i, 0))]
    flat_args = [x2d]
    for (w_p, b_p) in padded_params:
        in_specs.append(_const_block_spec(w_p.shape, single_buffer_weights))
        in_specs.append(_const_block_spec(b_p.shape, single_buffer_weights))
        flat_args.extend([w_p, b_p])
    out_spec = pl.BlockSpec((tm, dims_pad[-1]), lambda i: (i, 0))

    flops = sum(2 * M * dims_pad[i] * dims_pad[i + 1] for i in range(num_layers))
    bytes_accessed = M * dims_pad[0] * 4 + M * dims_pad[-1] * 4 + weight_bytes
    cost = pl.CostEstimate(flops=flops, transcendentals=0,
                           bytes_accessed=int(bytes_accessed))

    kernel = functools.partial(_mlp_kernel, num_layers=num_layers,
                               operand_dtype=operand_dtype)

    out_p = pl.pallas_call(
        kernel,
        out_shape=jax.ShapeDtypeStruct((M, dims_pad[-1]), jnp.float32),
        grid_spec=pltpu.PrefetchScalarGridSpec(
            num_scalar_prefetch=0,
            grid=grid,
            in_specs=in_specs,
            out_specs=out_spec,
        ),
        compiler_params=pltpu.CompilerParams(
            dimension_semantics=("parallel",),
            vmem_limit_bytes=vmem_limit,
        ),
        cost_estimate=cost,
    )(*flat_args)

    out = out_p[:, :out_dim]
    return out.reshape(*lead, out_dim)


class MLPPallas:
    """Mirror of the PyTorch MLP: num_layers Linear layers, ReLU on all but last."""

    def __init__(self, input_dim, hidden_dim, output_dim, num_layers, key,
                 operand_dtype=jnp.bfloat16, tm_max=512):
        self.num_layers = num_layers
        self.operand_dtype = operand_dtype
        h = [hidden_dim] * (num_layers - 1)
        dims = [input_dim] + h + [output_dim]
        dims_pad = [_round_up(d, 128) for d in dims]

        # nn.Linear default init; W stored as (in, out) so y = x @ W + b.
        self.params = []
        for n_in, n_out in zip(dims[:-1], dims[1:]):
            key, kw, kb = jax.random.split(key, 3)
            bound = 1.0 / math.sqrt(n_in)
            w = jax.random.uniform(kw, (n_in, n_out), jnp.float32, -bound, bound)
            b = jax.random.uniform(kb, (n_out,), jnp.float32, -bound, bound)
            self.params.append((w, b))

        # Zero-pad to lane-dense 128-multiples and cast weights to the matmul
        # operand dtype ONCE (hoisted out of the jitted forward).
        self.padded_params = []
        for li, (w, b) in enumerate(self.params):
            kp, np_ = dims_pad[li], dims_pad[li + 1]
            w_p = (jnp.zeros((kp, np_), jnp.float32)
                   .at[: w.shape[0], : w.shape[1]].set(w)
                   .astype(operand_dtype))
            b_p = jnp.zeros((1, np_), jnp.float32).at[0, : b.shape[0]].set(b)
            self.padded_params.append((w_p, b_p))

        fwd = functools.partial(mlp_forward_pallas, out_dim=output_dim,
                                operand_dtype=operand_dtype, tm_max=tm_max)
        self._fwd_fast = jax.jit(functools.partial(fwd, single_buffer_weights=True))
        self._fwd_safe = jax.jit(functools.partial(fwd, single_buffer_weights=False))
        self._use_fast = True

    def __call__(self, x):
        if self._use_fast:
            try:
                return self._fwd_fast(x, self.padded_params)
            except Exception:
                # pl.Buffered(1) unsupported on this jax build -> default buffering.
                self._use_fast = False
        return self._fwd_safe(x, self.padded_params)


def mlp_reference(x, params, num_layers, operand_dtype=jnp.float32):
    """Pure-JAX reference; operand_dtype mirrors the kernel's matmul precision."""
    lead = x.shape[:-1]
    y = x.reshape(-1, x.shape[-1]).astype(jnp.float32)
    for i, (w, b) in enumerate(params):
        y = jnp.dot(y.astype(operand_dtype), w.astype(operand_dtype),
                    preferred_element_type=jnp.float32) + b.astype(jnp.float32)
        if i < num_layers - 1:
            y = jnp.maximum(y, 0.0)
    return y.reshape(*lead, y.shape[-1])


if __name__ == "__main__":
    key = jax.random.PRNGKey(0)
    k_x, k_p = jax.random.split(key)

    batch, seq = 2, 8
    input_dim, hidden_dim, output_dim, num_layers = 32, 32, 16, 3

    x = jax.random.normal(k_x, (batch, seq, input_dim), jnp.float32)

    mlp = MLPPallas(input_dim, hidden_dim, output_dim, num_layers, k_p)
    out = jax.block_until_ready(mlp(x))
    assert out.shape == (batch, seq, output_dim)

    # Tight check against a precision-matched reference (bf16 operands,
    # f32 accumulation -- same math as the kernel).
    ref_bf16 = mlp_reference(x, mlp.params, num_layers, operand_dtype=jnp.bfloat16)
    assert jnp.allclose(out, ref_bf16, atol=2e-3, rtol=2e-3)

    # Loose check against the full-f32 reference (semantic equivalence to the
    # PyTorch module; bf16 operand rounding bounded well under this tolerance).
    ref_f32 = mlp_reference(x, mlp.params, num_layers, operand_dtype=jnp.float32)
    assert jnp.allclose(out, ref_f32, atol=5e-2, rtol=5e-2)

    print("KERNEL_OK")
</pallas_src>

<mosaic_0001>
module attributes {stable_mosaic.version = 11 : i64} {
  func.func @_mlp_kernel(%arg0: i32, %arg1: memref<8x128xf32, #tpu.memory_space<vmem>>, %arg2: memref<128x128xbf16, #tpu.memory_space<vmem>>, %arg3: memref<1x128xf32, #tpu.memory_space<vmem>>, %arg4: memref<128x128xbf16, #tpu.memory_space<vmem>>, %arg5: memref<1x128xf32, #tpu.memory_space<vmem>>, %arg6: memref<128x128xbf16, #tpu.memory_space<vmem>>, %arg7: memref<1x128xf32, #tpu.memory_space<vmem>>, %arg8: memref<8x128xf32, #tpu.memory_space<vmem>>) attributes {dimension_semantics = [#tpu.dimension_semantics<parallel>], iteration_bounds = array<i64: 2>, scalar_prefetch = 0 : i64, scratch_operands = 0 : i64, tpu.core_type = #tpu.core_type<tc>, window_params = [{transform_indices = @transform_0, window_bounds = array<i64: 8, 128>}, {pipeline_mode = #tpu.pipeline_mode<synchronous>, transform_indices = @transform_1, window_bounds = array<i64: 128, 128>}, {pipeline_mode = #tpu.pipeline_mode<synchronous>, transform_indices = @transform_2, window_bounds = array<i64: 1, 128>}, {pipeline_mode = #tpu.pipeline_mode<synchronous>, transform_indices = @transform_3, window_bounds = array<i64: 128, 128>}, {pipeline_mode = #tpu.pipeline_mode<synchronous>, transform_indices = @transform_4, window_bounds = array<i64: 1, 128>}, {pipeline_mode = #tpu.pipeline_mode<synchronous>, transform_indices = @transform_5, window_bounds = array<i64: 128, 128>}, {pipeline_mode = #tpu.pipeline_mode<synchronous>, transform_indices = @transform_6, window_bounds = array<i64: 1, 128>}, {transform_indices = @transform_7, window_bounds = array<i64: 8, 128>}]} {
    %c0 = arith.constant 0 : index
    %c0_0 = arith.constant 0 : index
    %0 = vector.load %arg1[%c0, %c0_0] : memref<8x128xf32, #tpu.memory_space<vmem>>, vector<8x128xf32>
    %c0_1 = arith.constant 0 : index
    %c0_2 = arith.constant 0 : index
    %1 = vector.load %arg2[%c0_1, %c0_2] : memref<128x128xbf16, #tpu.memory_space<vmem>>, vector<128x128xbf16>
    %c0_3 = arith.constant 0 : index
    %c0_4 = arith.constant 0 : index
    %2 = vector.load %arg3[%c0_3, %c0_4] : memref<1x128xf32, #tpu.memory_space<vmem>>, vector<1x128xf32>
    %3 = arith.truncf %0 : vector<8x128xf32> to vector<8x128xbf16>
    %cst = arith.constant dense<0.000000e+00> : vector<8x128xf32>
    %4 = tpu.matmul %3, %1, %cst {dimension_numbers = #tpu.dot_dimension_numbers<[1], [0], [0], [1], [0, 0, 1, 1], [], []>} : vector<8x128xbf16>, vector<128x128xbf16>, vector<8x128xf32> -> vector<8x128xf32>
    %5 = vector.broadcast %2 : vector<1x128xf32> to vector<8x128xf32>
    %6 = arith.addf %4, %5 : vector<8x128xf32>
    %cst_5 = arith.constant 0.000000e+00 : f32
    %7 = vector.broadcast %cst_5 : f32 to vector<8x128xf32>
    %8 = arith.maximumf %6, %7 : vector<8x128xf32>
    %c0_6 = arith.constant 0 : index
    %c0_7 = arith.constant 0 : index
    %9 = vector.load %arg4[%c0_6, %c0_7] : memref<128x128xbf16, #tpu.memory_space<vmem>>, vector<128x128xbf16>
    %c0_8 = arith.constant 0 : index
    %c0_9 = arith.constant 0 : index
    %10 = vector.load %arg5[%c0_8, %c0_9] : memref<1x128xf32, #tpu.memory_space<vmem>>, vector<1x128xf32>
    %11 = arith.truncf %8 : vector<8x128xf32> to vector<8x128xbf16>
    %cst_10 = arith.constant dense<0.000000e+00> : vector<8x128xf32>
    %12 = tpu.matmul %11, %9, %cst_10 {dimension_numbers = #tpu.dot_dimension_numbers<[1], [0], [0], [1], [0, 0, 1, 1], [], []>} : vector<8x128xbf16>, vector<128x128xbf16>, vector<8x128xf32> -> vector<8x128xf32>
    %13 = vector.broadcast %10 : vector<1x128xf32> to vector<8x128xf32>
    %14 = arith.addf %12, %13 : vector<8x128xf32>
    %cst_11 = arith.constant 0.000000e+00 : f32
    %15 = vector.broadcast %cst_11 : f32 to vector<8x128xf32>
    %16 = arith.maximumf %14, %15 : vector<8x128xf32>
    %c0_12 = arith.constant 0 : index
    %c0_13 = arith.constant 0 : index
    %17 = vector.load %arg6[%c0_12, %c0_13] : memref<128x128xbf16, #tpu.memory_space<vmem>>, vector<128x128xbf16>
    %c0_14 = arith.constant 0 : index
    %c0_15 = arith.constant 0 : index
    %18 = vector.load %arg7[%c0_14, %c0_15] : memref<1x128xf32, #tpu.memory_space<vmem>>, vector<1x128xf32>
    %19 = arith.truncf %16 : vector<8x128xf32> to vector<8x128xbf16>
    %cst_16 = arith.constant dense<0.000000e+00> : vector<8x128xf32>
    %20 = tpu.matmul %19, %17, %cst_16 {dimension_numbers = #tpu.dot_dimension_numbers<[1], [0], [0], [1], [0, 0, 1, 1], [], []>} : vector<8x128xbf16>, vector<128x128xbf16>, vector<8x128xf32> -> vector<8x128xf32>
    %21 = vector.broadcast %18 : vector<1x128xf32> to vector<8x128xf32>
    %22 = arith.addf %20, %21 : vector<8x128xf32>
    %c0_17 = arith.constant 0 : index
    %c0_18 = arith.constant 0 : index
    %23 = vector.load %arg8[%c0_17, %c0_18] : memref<8x128xf32, #tpu.memory_space<vmem>>, vector<8x128xf32>
    tpu.vector_store %arg8[%c0_17, %c0_18], %22 {strides = array<i32>} : memref<8x128xf32, #tpu.memory_space<vmem>>, vector<8x128xf32>,
    return
  }
  func.func @transform_0(%arg0: i32) -> (i32, i32) {
    %c0_i32 = arith.constant 0 : i32
    %c0_i32_0 = arith.constant 0 : i32
    return %arg0, %c0_i32 : i32, i32
  }
  func.func @transform_1(%arg0: i32) -> (i32, i32) {
    %c0_i32 = arith.constant 0 : i32
    %c0_i32_0 = arith.constant 0 : i32
    %c0_i32_1 = arith.constant 0 : i32
    return %c0_i32, %c0_i32_0 : i32, i32
  }
  func.func @transform_2(%arg0: i32) -> (i32, i32) {
    %c0_i32 = arith.constant 0 : i32
    %c0_i32_0 = arith.constant 0 : i32
    %c0_i32_1 = arith.constant 0 : i32
    return %c0_i32, %c0_i32_0 : i32, i32
  }
  func.func @transform_3(%arg0: i32) -> (i32, i32) {
    %c0_i32 = arith.constant 0 : i32
    %c0_i32_0 = arith.constant 0 : i32
    %c0_i32_1 = arith.constant 0 : i32
    return %c0_i32, %c0_i32_0 : i32, i32
  }
  func.func @transform_4(%arg0: i32) -> (i32, i32) {
    %c0_i32 = arith.constant 0 : i32
    %c0_i32_0 = arith.constant 0 : i32
    %c0_i32_1 = arith.constant 0 : i32
    return %c0_i32, %c0_i32_0 : i32, i32
  }
  func.func @transform_5(%arg0: i32) -> (i32, i32) {
    %c0_i32 = arith.constant 0 : i32
    %c0_i32_0 = arith.constant 0 : i32
    %c0_i32_1 = arith.constant 0 : i32
    return %c0_i32, %c0_i32_0 : i32, i32
  }
  func.func @transform_6(%arg0: i32) -> (i32, i32) {
    %c0_i32 = arith.constant 0 : i32
    %c0_i32_0 = arith.constant 0 : i32
    %c0_i32_1 = arith.constant 0 : i32
    return %c0_i32, %c0_i32_0 : i32, i32
  }
  func.func @transform_7(%arg0: i32) -> (i32, i32) {
    %c0_i32 = arith.constant 0 : i32
    %c0_i32_0 = arith.constant 0 : i32
    return %arg0, %c0_i32 : i32, i32
  }
}

module attributes {stable_mosaic.version = 11 : i64} {
  func.func @_mlp_kernel(%arg0: i32, %arg1: memref<8x128xf32, #tpu.memory_space<vmem>>, %arg2: memref<128x128xbf16, #tpu.memory_space<vmem>>, %arg3: memref<1x128xf32, #tpu.memory_space<vmem>>, %arg4: memref<128x128xbf16, #tpu.memory_space<vmem>>, %arg5: memref<1x128xf32, #tpu.memory_space<vmem>>, %arg6: memref<128x128xbf16, #tpu.memory_space<vmem>>, %arg7: memref<1x128xf32, #tpu.memory_space<vmem>>, %arg8: memref<8x128xf32, #tpu.memory_space<vmem>>) attributes {dimension_semantics = [#tpu.dimension_semantics<parallel>], iteration_bounds = array<i64: 2>, scalar_prefetch = 0 : i64, scratch_operands = 0 : i64, tpu.core_type = #tpu.core_type<tc>, window_params = [{transform_indices = @transform_0, window_bounds = array<i64: 8, 128>}, {pipeline_mode = #tpu.pipeline_mode<synchronous>, transform_indices = @transform_1, window_bounds = array<i64: 128, 128>}, {pipeline_mode = #tpu.pipeline_mode<synchronous>, transform_indices = @transform_2, window_bounds = array<i64: 1, 128>}, {pipeline_mode = #tpu.pipeline_mode<synchronous>, transform_indices = @transform_3, window_bounds = array<i64: 128, 128>}, {pipeline_mode = #tpu.pipeline_mode<synchronous>, transform_indices = @transform_4, window_bounds = array<i64: 1, 128>}, {pipeline_mode = #tpu.pipeline_mode<synchronous>, transform_indices = @transform_5, window_bounds = array<i64: 128, 128>}, {pipeline_mode = #tpu.pipeline_mode<synchronous>, transform_indices = @transform_6, window_bounds = array<i64: 1, 128>}, {transform_indices = @transform_7, window_bounds = array<i64: 8, 128>}]} {
    %c0 = arith.constant 0 : index
    %c0_0 = arith.constant 0 : index
    %0 = vector.load %arg1[%c0, %c0_0] : memref<8x128xf32, #tpu.memory_space<vmem>>, vector<8x128xf32>
    %c0_1 = arith.constant 0 : index
    %c0_2 = arith.constant 0 : index
    %1 = vector.load %arg2[%c0_1, %c0_2] : memref<128x128xbf16, #tpu.memory_space<vmem>>, vector<128x128xbf16>
    %c0_3 = arith.constant 0 : index
    %c0_4 = arith.constant 0 : index
    %2 = vector.load %arg3[%c0_3, %c0_4] : memref<1x128xf32, #tpu.memory_space<vmem>>, vector<1x128xf32>
    %3 = arith.truncf %0 : vector<8x128xf32> to vector<8x128xbf16>
    %cst = arith.constant dense<0.000000e+00> : vector<8x128xf32>
    %4 = tpu.matmul %3, %1, %cst {dimension_numbers = #tpu.dot_dimension_numbers<[1], [0], [0], [1], [0, 0, 1, 1], [], []>} : vector<8x128xbf16>, vector<128x128xbf16>, vector<8x128xf32> -> vector<8x128xf32>
    %5 = vector.broadcast %2 : vector<1x128xf32> to vector<8x128xf32>
    %6 = arith.addf %4, %5 : vector<8x128xf32>
    %cst_5 = arith.constant 0.000000e+00 : f32
    %7 = vector.broadcast %cst_5 : f32 to vector<8x128xf32>
    %8 = arith.maximumf %6, %7 : vector<8x128xf32>
    %c0_6 = arith.constant 0 : index
    %c0_7 = arith.constant 0 : index
    %9 = vector.load %arg4[%c0_6, %c0_7] : memref<128x128xbf16, #tpu.memory_space<vmem>>, vector<128x128xbf16>
    %c0_8 = arith.constant 0 : index
    %c0_9 = arith.constant 0 : index
    %10 = vector.load %arg5[%c0_8, %c0_9] : memref<1x128xf32, #tpu.memory_space<vmem>>, vector<1x128xf32>
    %11 = arith.truncf %8 : vector<8x128xf32> to vector<8x128xbf16>
    %cst_10 = arith.constant dense<0.000000e+00> : vector<8x128xf32>
    %12 = tpu.matmul %11, %9, %cst_10 {dimension_numbers = #tpu.dot_dimension_numbers<[1], [0], [0], [1], [0, 0, 1, 1], [], []>} : vector<8x128xbf16>, vector<128x128xbf16>, vector<8x128xf32> -> vector<8x128xf32>
    %13 = vector.broadcast %10 : vector<1x128xf32> to vector<8x128xf32>
    %14 = arith.addf %12, %13 : vector<8x128xf32>
    %cst_11 = arith.constant 0.000000e+00 : f32
    %15 = vector.broadcast %cst_11 : f32 to vector<8x128xf32>
    %16 = arith.maximumf %14, %15 : vector<8x128xf32>
    %c0_12 = arith.constant 0 : index
    %c0_13 = arith.constant 0 : index
    %17 = vector.load %arg6[%c0_12, %c0_13] : memref<128x128xbf16, #tpu.memory_space<vmem>>, vector<128x128xbf16>
    %c0_14 = arith.constant 0 : index
    %c0_15 = arith.constant 0 : index
    %18 = vector.load %arg7[%c0_14, %c0_15] : memref<1x128xf32, #tpu.memory_space<vmem>>, vector<1x128xf32>
    %19 = arith.truncf %16 : vector<8x128xf32> to vector<8x128xbf16>
    %cst_16 = arith.constant dense<0.000000e+00> : vector<8x128xf32>
    %20 = tpu.matmul %19, %17, %cst_16 {dimension_numbers = #tpu.dot_dimension_numbers<[1], [0], [0], [1], [0, 0, 1, 1], [], []>} : vector<8x128xbf16>, vector<128x128xbf16>, vector<8x128xf32> -> vector<8x128xf32>
    %21 = vector.broadcast %18 : vector<1x128xf32> to vector<8x128xf32>
    %22 = arith.addf %20, %21 : vector<8x128xf32>
    %c0_17 = arith.constant 0 : index
    %c0_18 = arith.constant 0 : index
    %23 = vector.load %arg8[%c0_17, %c0_18] : memref<8x128xf32, #tpu.memory_space<vmem>>, vector<8x128xf32>
    tpu.vector_store %arg8[%c0_17, %c0_18], %22 {strides = array<i32>} : memref<8x128xf32, #tpu.memory_space<vmem>>, vector<8x128xf32>,
    return
  }
  func.func @transform_0(%arg0: i32) -> (i32, i32) {
    %c0_i32 = arith.constant 0 : i32
    %c0_i32_0 = arith.constant 0 : i32
    return %arg0, %c0_i32 : i32, i32
  }
  func.func @transform_1(%arg0: i32) -> (i32, i32) {
    %c0_i32 = arith.constant 0 : i32
    %c0_i32_0 = arith.constant 0 : i32
    %c0_i32_1 = arith.constant 0 : i32
    return %c0_i32, %c0_i32_0 : i32, i32
  }
  func.func @transform_2(%arg0: i32) -> (i32, i32) {
    %c0_i32 = arith.constant 0 : i32
    %c0_i32_0 = arith.constant 0 : i32
    %c0_i32_1 = arith.constant 0 : i32
    return %c0_i32, %c0_i32_0 : i32, i32
  }
  func.func @transform_3(%arg0: i32) -> (i32, i32) {
    %c0_i32 = arith.constant 0 : i32
    %c0_i32_0 = arith.constant 0 : i32
    %c0_i32_1 = arith.constant 0 : i32
    return %c0_i32, %c0_i32_0 : i32, i32
  }
  func.func @transform_4(%arg0: i32) -> (i32, i32) {
    %c0_i32 = arith.constant 0 : i32
    %c0_i32_0 = arith.constant 0 : i32
    %c0_i32_1 = arith.constant 0 : i32
    return %c0_i32, %c0_i32_0 : i32, i32
  }
  func.func @transform_5(%arg0: i32) -> (i32, i32) {
    %c0_i32 = arith.constant 0 : i32
    %c0_i32_0 = arith.constant 0 : i32
    %c0_i32_1 = arith.constant 0 : i32
    return %c0_i32, %c0_i32_0 : i32, i32
  }
  func.func @transform_6(%arg0: i32) -> (i32, i32) {
    %c0_i32 = arith.constant 0 : i32
    %c0_i32_0 = arith.constant 0 : i32
    %c0_i32_1 = arith.constant 0 : i32
    return %c0_i32, %c0_i32_0 : i32, i32
  }
  func.func @transform_7(%arg0: i32) -> (i32, i32) {
    %c0_i32 = arith.constant 0 : i32
    %c0_i32_0 = arith.constant 0 : i32
    return %arg0, %c0_i32 : i32, i32
  }
}

</mosaic_0001>

<bundles_post_ra>
// kernel: mlp_forward_pallas.1
= control target key start
LH: loop header
LB: loop body
LE: loop exit
PB: predicated region body
PF: predicated region fallthrough
CT: control target
= control target key end

     0   :  { %12 = vsyncpa [#allocation3], 0  ;;  %s1053_s0 = inlined_call_operand.vmem [shape: f32[16,128], index: 0, kind: input, shape index: {}]   ;;  %s1054_s1 = inlined_call_operand.hbm [shape: bf16[128,128], index: 1, kind: input, shape index: {}]   ;;  %s1055_s2 = inlined_call_operand.vmem [shape: f32[1,128], index: 2, kind: input, shape index: {}]   ;;  %s1056_s3 = inlined_call_operand.hbm [shape: bf16[128,128], index: 3, kind: input, shape index: {}]   ;;  %s1057_s4 = inlined_call_operand.vmem [shape: f32[1,128], index: 4, kind: input, shape index: {}]   ;;  %s1058_s5 = inlined_call_operand.hbm [shape: bf16[128,128], index: 5, kind: input, shape index: {}]   ;;  %s1059_s6 = inlined_call_operand.vmem [shape: f32[1,128], index: 6, kind: input, shape index: {}]   ;;  %s1060_s7 = inlined_call_operand.vmem [shape: f32[16,128], index: 7, kind: output, shape index: {}]  }
   0x1   :  { %13 = vsyncpa [#allocation5], 0  ;;  %s988_s24 = smov 0  }
   0x2 LB: > { %s994_s25 = sadd.s32 4294967295, %s941_s24   ;;  %p660_p0 = scmp.ge.s32.totalorder %s941_s24, 1  ;;  %s941_s24 = sphi %s988_s24, %s19_s24  }
   0x3   : > { %p202_p1 = scmp.lt.s32.totalorder %s941_s24, 3  ;;  %p815_p2 = scmp.eq.s32.totalorder %s994_s25, 0 }
   0x4   : > { %s230_s28 = sshll.u32 %s1056_s3, 4  ;;  %s213_s9 = sshll.u32 %s1054_s1, 4  ;;  %s231_s28 = int_to_ptr.hbm [resolvable:$true] %s230_s28  ;;  %s214_s9 = int_to_ptr.hbm [resolvable:$true] %s213_s9 }
   0x5   : > { %p1002_p3 = pnand %p660_p0, %p202_p1  ;;  %s943_s10 = smov [#allocation4]  }
   0x6   : > { %s232_s11 = sshll.u32 %s943_s10, 4  ;;  %s944_s12 = smov [#allocation2]   ;;  %s233_s11 = int_to_ptr.vmem [resolvable:$true] %s232_s11 }
   0x7   : > { %p805_p4 = pneg %p1002_p3  ;;  %s215_s13 = sshll.u32 %s944_s12, 4  ;;  %s216_s13 = int_to_ptr.vmem [resolvable:$true] %s215_s13 }
   0x8   : > { %s247_s16 = sshll.u32 %s1058_s5, 4  ;;  %s945_s17 = smov 64   ;;  %s248_s16 = int_to_ptr.hbm [resolvable:$true] %s247_s16 }
   0x9   : > { %p806_p5 = pnand %p815_p2, %p805_p4  ;;  %s946_s18 = smov 4  }
   0xa   : > { %s947_s19 = smov [#allocation6]   ;;  %275 = sbr.rel (%p1002_p3) target bundleno = 454 (0x1c6), region = 48 }
   0xb   : > { %811 = dma.hbm_to_vmem [thread:$0]  (!%p806_p5), %s231_s28, 1024, %s233_s11, [#allocation5], %s945_s17, %s945_s17, %s946_s18  }
   0xc   : > { %808 = dma.hbm_to_vmem [thread:$0]  (!%p806_p5), %s214_s9, 1024, %s216_s13, [#allocation3], %s945_s17, %s945_s17, %s946_s18  }
   0xd   : > { %s249_s20 = sshll.u32 %s947_s19, 4  ;;  %s250_s20 = int_to_ptr.vmem [resolvable:$true] %s249_s20 }
   0xe   : > { %814 = dma.hbm_to_vmem [thread:$0]  (!%p806_p5), %s248_s16, 1024, %s250_s20, [#allocation5], %s945_s17, %s945_s17, %s946_s18  }
   0xf   : > { %932 = dma.done.wait (%p815_p2), [#allocation3], 1024  }
  0x10   : > { %934 = vsyncadd (%p815_p2), [#allocation3], 4294966272 }
  0x11   : > { %936 = dma.done.wait (%p815_p2), [#allocation5], 2048  }
  0x12   : > { %938 = vsyncadd (%p815_p2), [#allocation5], 4294965248  ;;  %v776_v0 = vld [vmem:[#allocation2 + $0x38] sm:$0xff]  ;;  %v775_v1 = vld [vmem:[#allocation2 + $0x30] sm:$0xff]  ;;  %p316_p6 = scmp.lt.s32.totalorder %s994_s25, 1 }
  0x13   : > { %394 = vmatpush.bf16.msra.mxu0 %v776_v0  ;;  %v784_v2 = vld [vmem:[#allocation4 + $0x38] sm:$0xff]  ;;  %v783_v3 = vld [vmem:[#allocation4 + $0x30] sm:$0xff]  ;;  %v774_v4 = vld [vmem:[#allocation2 + $0x28] sm:$0xff] }
  0x14   : > { %477 = vmatpush.bf16.msra.mxu1 %v784_v2  ;;  %v782_v5 = vld [vmem:[#allocation4 + $0x28] sm:$0xff]  ;;  %v773_v6 = vld [vmem:[#allocation2 + $0x20] sm:$0xff]  ;;  %v772_v8 = vld [vmem:[#allocation2 + $0x18] sm:$0xff]  ;;  %s1063_s25 = smov (!%p316_p6, %s994_s25), 1 }
  0x15   : > { %v781_v7 = vld [vmem:[#allocation4 + $0x20] sm:$0xff]  ;;  %v780_v9 = vld [vmem:[#allocation4 + $0x18] sm:$0xff]  ;;  %v771_v10 = vld [vmem:[#allocation2 + $0x10] sm:$0xff]  ;;  %s669_s21 = sshll.u32 %s1063_s25, 3 }
  0x16   : > { %v779_v11 = vld [vmem:[#allocation4 + $0x10] sm:$0xff]  ;;  %v770_v12 = vld [vmem:[#allocation2 + $0x8] sm:$0xff]  ;;  %s319_s26 = scalar_lea.vmem %s1053_s0, %s669_s21  ;;  %v769_v13 = vld [vmem:[#allocation2] sm:$0xff]  ;;  %s323_s12 = scalar_lea.vmem %s1060_s7, %s669_s21 }
  0x17   : > { %395 = vmatpush.bf16.msra.mxu0 %v775_v1  ;;  %v324_v14 = vld [vmem:[%s319_s26] sm:$0xff]  ;;  %v778_v16 = vld [vmem:[#allocation4 + $0x8] sm:$0xff]  ;;  %v792_v18 = vld [vmem:[#allocation6 + $0x38] sm:$0xff] }
  0x18   : > { %478 = vmatpush.bf16.msra.mxu1 %v783_v3  ;;  %v342_v15 = vpack.c.bf16 %v324_v14, %v324_v14  ;;  %v777_v17 = vld [vmem:[#allocation4] sm:$0xff]  ;;  %560 = vmatpush.bf16.msra.mxu2 %v792_v18  ;;  %v791_v19 = vld [vmem:[#allocation6 + $0x30] sm:$0xff]  ;;  %v790_v20 = vld [vmem:[#allocation6 + $0x28] sm:$0xff] }
  0x19   : > { %v789_v21 = vld [vmem:[#allocation6 + $0x20] sm:$0xff]  ;;  %v788_v22 = vld [vmem:[#allocation6 + $0x18] sm:$0xff]  ;;  %v787_v23 = vld [vmem:[#allocation6 + $0x10] sm:$0xff] }
  0x1a   : > { %v834_v24 = vld [vmem:[%s1055_s2] ss:$0 sm:$0xff]  ;;  %v786_v30 = vld [vmem:[#allocation6 + $0x8] sm:$0xff] }
  0x1b   : > { %396 = vmatpush.bf16.msra.mxu0 %v774_v4  ;;  %v785_v31 = vld [vmem:[#allocation6] sm:$0xff] }
  0x1c   : > { %479 = vmatpush.bf16.msra.mxu1 %v782_v5  ;;  %561 = vmatpush.bf16.msra.mxu2 %v791_v19  ;;  %v835_v32 = vld [vmem:[%s1057_s4] ss:$0 sm:$0xff] }
  0x1d   : > { %v836_v38 = vld [vmem:[%s1059_s6] ss:$0 sm:$0xff] }
  0x1f   : > { %397 = vmatpush.bf16.msra.mxu0 %v773_v6 }
  0x20   : > { %480 = vmatpush.bf16.msra.mxu1 %v781_v7  ;;  %562 = vmatpush.bf16.msra.mxu2 %v790_v20 }
  0x23   : > { %398 = vmatpush.bf16.msra.mxu0 %v772_v8 }
  0x24   : > { %481 = vmatpush.bf16.msra.mxu1 %v780_v9  ;;  %563 = vmatpush.bf16.msra.mxu2 %v789_v21 }
  0x27   : > { %399 = vmatpush.bf16.msra.mxu0 %v771_v10 }
  0x28   : > { %482 = vmatpush.bf16.msra.mxu1 %v779_v11  ;;  %564 = vmatpush.bf16.msra.mxu2 %v788_v22 }
  0x2b   : > { %400 = vmatpush.bf16.msra.mxu0 %v770_v12 }
  0x2c   : > { %483 = vmatpush.bf16.msra.mxu1 %v778_v16  ;;  %565 = vmatpush.bf16.msra.mxu2 %v787_v23 }
  0x2f   : > { %401 = vmatpush.bf16.msra.mxu0 %v769_v13 }
  0x30   : > { %484 = vmatpush.bf16.msra.mxu1 %v777_v17  ;;  %566 = vmatpush.bf16.msra.mxu2 %v786_v30 }
  0x32   : > { %402 = vmatmul.bf16.vlgmr.msra.gmra.mxu0 %v342_v15 }
  0x34   : > { %567 = vmatpush.bf16.msra.mxu2 %v785_v31 }
  0xaf   : > { %v403_v25 = vpop.f32.mrf.mxu0 }
  0xb0   : > { %v404_v26 = vadd.f32 %v834_v24, %v403_v25 }
  0xb2   : > { %v407_v27 = vmax.f32 %v404_v26, 0.0 }
  0xb4   : > { %v425_v28 = vpack.c.bf16 %v407_v27, %v407_v27 }
  0xb6   : > { %485 = vmatmul.bf16.vlgmr.msra.gmra.mxu1 %v425_v28 }
  0xb7   : > { %v405_v29 = vpop.f32.mrf.mxu0 }
 0x133   : > { %v486_v33 = vpop.f32.mrf.mxu1 }
 0x134   : > { %v487_v34 = vadd.f32 %v835_v32, %v486_v33 }
 0x136   : > { %v490_v35 = vmax.f32 %v487_v34, 0.0 }
 0x138   : > { %v508_v36 = vpack.c.bf16 %v490_v35, %v490_v35 }
 0x13a   : > { %568 = vmatmul.bf16.vlgmr.msra.gmra.mxu2 %v508_v36 }
 0x13b   : > { %v488_v37 = vpop.f32.mrf.mxu1 }
 0x1bd   : > { %v569_v39 = vpop.f32.mrf.mxu2 }
 0x1be   : > { %v570_v40 = vadd.f32 %v836_v38, %v569_v39 }
 0x1c0   : > { %573 = vst [vmem:[%s323_s12] sm:$0xff] %v570_v40 }
 0x1c5   : > { %v571_v41 = vpop.f32.mrf.mxu2 }
 0x1c6 PF: > { %s19_s24 = sadd.s32 1, %s941_s24  }
 0x1c7   : > { %p16_p7 = scmp.ge.s32.totalorder %s19_s24, 4  }
 0x1c9   :  { %18 = sbr.rel (!%p16_p7) target bundleno = 2 (0x2), region = 91 }
 0x1ce   :  { %593 = vsyncpa [#allocation3], 1 }
 0x1cf   :  { %595 = vsyncpa [#allocation3 + $0x1], 1 }
 0x1d0   :  { %596 = vsyncpa [#allocation5], 1 }

// kernel: mlp_forward_pallas.1
= control target key start
LH: loop header
LB: loop body
LE: loop exit
PB: predicated region body
PF: predicated region fallthrough
CT: control target
= control target key end

     0   :  { %12 = vsyncpa [#allocation3], 0  ;;  %s1053_s0 = inlined_call_operand.vmem [shape: f32[16,128], index: 0, kind: input, shape index: {}]   ;;  %s1054_s1 = inlined_call_operand.hbm [shape: bf16[128,128], index: 1, kind: input, shape index: {}]   ;;  %s1055_s2 = inlined_call_operand.vmem [shape: f32[1,128], index: 2, kind: input, shape index: {}]   ;;  %s1056_s3 = inlined_call_operand.hbm [shape: bf16[128,128], index: 3, kind: input, shape index: {}]   ;;  %s1057_s4 = inlined_call_operand.vmem [shape: f32[1,128], index: 4, kind: input, shape index: {}]   ;;  %s1058_s5 = inlined_call_operand.hbm [shape: bf16[128,128], index: 5, kind: input, shape index: {}]   ;;  %s1059_s6 = inlined_call_operand.vmem [shape: f32[1,128], index: 6, kind: input, shape index: {}]   ;;  %s1060_s7 = inlined_call_operand.vmem [shape: f32[16,128], index: 7, kind: output, shape index: {}]  }
   0x1   :  { %13 = vsyncpa [#allocation5], 0  ;;  %s988_s24 = smov 0  }
   0x2 LB: > { %s994_s25 = sadd.s32 4294967295, %s941_s24   ;;  %p660_p0 = scmp.ge.s32.totalorder %s941_s24, 1  ;;  %s941_s24 = sphi %s988_s24, %s19_s24  }
   0x3   : > { %p202_p1 = scmp.lt.s32.totalorder %s941_s24, 3  ;;  %p815_p2 = scmp.eq.s32.totalorder %s994_s25, 0 }
   0x4   : > { %s230_s28 = sshll.u32 %s1056_s3, 4  ;;  %s213_s9 = sshll.u32 %s1054_s1, 4  ;;  %s231_s28 = int_to_ptr.hbm [resolvable:$true] %s230_s28  ;;  %s214_s9 = int_to_ptr.hbm [resolvable:$true] %s213_s9 }
   0x5   : > { %p1002_p3 = pnand %p660_p0, %p202_p1  ;;  %s943_s10 = smov [#allocation4]  }
   0x6   : > { %s232_s11 = sshll.u32 %s943_s10, 4  ;;  %s944_s12 = smov [#allocation2]   ;;  %s233_s11 = int_to_ptr.vmem [resolvable:$true] %s232_s11 }
   0x7   : > { %p805_p4 = pneg %p1002_p3  ;;  %s215_s13 = sshll.u32 %s944_s12, 4  ;;  %s216_s13 = int_to_ptr.vmem [resolvable:$true] %s215_s13 }
   0x8   : > { %s247_s16 = sshll.u32 %s1058_s5, 4  ;;  %s945_s17 = smov 64   ;;  %s248_s16 = int_to_ptr.hbm [resolvable:$true] %s247_s16 }
   0x9   : > { %p806_p5 = pnand %p815_p2, %p805_p4  ;;  %s946_s18 = smov 4  }
   0xa   : > { %s947_s19 = smov [#allocation6]   ;;  %275 = sbr.rel (%p1002_p3) target bundleno = 454 (0x1c6), region = 48 }
   0xb   : > { %811 = dma.hbm_to_vmem [thread:$0]  (!%p806_p5), %s231_s28, 1024, %s233_s11, [#allocation5], %s945_s17, %s945_s17, %s946_s18  }
   0xc   : > { %808 = dma.hbm_to_vmem [thread:$0]  (!%p806_p5), %s214_s9, 1024, %s216_s13, [#allocation3], %s945_s17, %s945_s17, %s946_s18  }
   0xd   : > { %s249_s20 = sshll.u32 %s947_s19, 4  ;;  %s250_s20 = int_to_ptr.vmem [resolvable:$true] %s249_s20 }
   0xe   : > { %814 = dma.hbm_to_vmem [thread:$0]  (!%p806_p5), %s248_s16, 1024, %s250_s20, [#allocation5], %s945_s17, %s945_s17, %s946_s18  }
   0xf   : > { %932 = dma.done.wait (%p815_p2), [#allocation3], 1024  }
  0x10   : > { %934 = vsyncadd (%p815_p2), [#allocation3], 4294966272 }
  0x11   : > { %936 = dma.done.wait (%p815_p2), [#allocation5], 2048  }
  0x12   : > { %938 = vsyncadd (%p815_p2), [#allocation5], 4294965248  ;;  %v776_v0 = vld [vmem:[#allocation2 + $0x38] sm:$0xff]  ;;  %v775_v1 = vld [vmem:[#allocation2 + $0x30] sm:$0xff]  ;;  %p316_p6 = scmp.lt.s32.totalorder %s994_s25, 1 }
  0x13   : > { %394 = vmatpush.bf16.msra.mxu0 %v776_v0  ;;  %v784_v2 = vld [vmem:[#allocation4 + $0x38] sm:$0xff]  ;;  %v783_v3 = vld [vmem:[#allocation4 + $0x30] sm:$0xff]  ;;  %v774_v4 = vld [vmem:[#allocation2 + $0x28] sm:$0xff] }
  0x14   : > { %477 = vmatpush.bf16.msra.mxu1 %v784_v2  ;;  %v782_v5 = vld [vmem:[#allocation4 + $0x28] sm:$0xff]  ;;  %v773_v6 = vld [vmem:[#allocation2 + $0x20] sm:$0xff]  ;;  %v772_v8 = vld [vmem:[#allocation2 + $0x18] sm:$0xff]  ;;  %s1063_s25 = smov (!%p316_p6, %s994_s25), 1 }
  0x15   : > { %v781_v7 = vld [vmem:[#allocation4 + $0x20] sm:$0xff]  ;;  %v780_v9 = vld [vmem:[#allocation4 + $0x18] sm:$0xff]  ;;  %v771_v10 = vld [vmem:[#allocation2 + $0x10] sm:$0xff]  ;;  %s669_s21 = sshll.u32 %s1063_s25, 3 }
  0x16   : > { %v779_v11 = vld [vmem:[#allocation4 + $0x10] sm:$0xff]  ;;  %v770_v12 = vld [vmem:[#allocation2 + $0x8] sm:$0xff]  ;;  %s319_s26 = scalar_lea.vmem %s1053_s0, %s669_s21  ;;  %v769_v13 = vld [vmem:[#allocation2] sm:$0xff]  ;;  %s323_s12 = scalar_lea.vmem %s1060_s7, %s669_s21 }
  0x17   : > { %395 = vmatpush.bf16.msra.mxu0 %v775_v1  ;;  %v324_v14 = vld [vmem:[%s319_s26] sm:$0xff]  ;;  %v778_v16 = vld [vmem:[#allocation4 + $0x8] sm:$0xff]  ;;  %v792_v18 = vld [vmem:[#allocation6 + $0x38] sm:$0xff] }
  0x18   : > { %478 = vmatpush.bf16.msra.mxu1 %v783_v3  ;;  %v342_v15 = vpack.c.bf16 %v324_v14, %v324_v14  ;;  %v777_v17 = vld [vmem:[#allocation4] sm:$0xff]  ;;  %560 = vmatpush.bf16.msra.mxu2 %v792_v18  ;;  %v791_v19 = vld [vmem:[#allocation6 + $0x30] sm:$0xff]  ;;  %v790_v20 = vld [vmem:[#allocation6 + $0x28] sm:$0xff] }
  0x19   : > { %v789_v21 = vld [vmem:[#allocation6 + $0x20] sm:$0xff]  ;;  %v788_v22 = vld [vmem:[#allocation6 + $0x18] sm:$0xff]  ;;  %v787_v23 = vld [vmem:[#allocation6 + $0x10] sm:$0xff] }
  0x1a   : > { %v834_v24 = vld [vmem:[%s1055_s2] ss:$0 sm:$0xff]  ;;  %v786_v30 = vld [vmem:[#allocation6 + $0x8] sm:$0xff] }
  0x1b   : > { %396 = vmatpush.bf16.msra.mxu0 %v774_v4  ;;  %v785_v31 = vld [vmem:[#allocation6] sm:$0xff] }
  0x1c   : > { %479 = vmatpush.bf16.msra.mxu1 %v782_v5  ;;  %561 = vmatpush.bf16.msra.mxu2 %v791_v19  ;;  %v835_v32 = vld [vmem:[%s1057_s4] ss:$0 sm:$0xff] }
  0x1d   : > { %v836_v38 = vld [vmem:[%s1059_s6] ss:$0 sm:$0xff] }
  0x1f   : > { %397 = vmatpush.bf16.msra.mxu0 %v773_v6 }
  0x20   : > { %480 = vmatpush.bf16.msra.mxu1 %v781_v7  ;;  %562 = vmatpush.bf16.msra.mxu2 %v790_v20 }
  0x23   : > { %398 = vmatpush.bf16.msra.mxu0 %v772_v8 }
  0x24   : > { %481 = vmatpush.bf16.msra.mxu1 %v780_v9  ;;  %563 = vmatpush.bf16.msra.mxu2 %v789_v21 }
  0x27   : > { %399 = vmatpush.bf16.msra.mxu0 %v771_v10 }
  0x28   : > { %482 = vmatpush.bf16.msra.mxu1 %v779_v11  ;;  %564 = vmatpush.bf16.msra.mxu2 %v788_v22 }
  0x2b   : > { %400 = vmatpush.bf16.msra.mxu0 %v770_v12 }
  0x2c   : > { %483 = vmatpush.bf16.msra.mxu1 %v778_v16  ;;  %565 = vmatpush.bf16.msra.mxu2 %v787_v23 }
  0x2f   : > { %401 = vmatpush.bf16.msra.mxu0 %v769_v13 }
  0x30   : > { %484 = vmatpush.bf16.msra.mxu1 %v777_v17  ;;  %566 = vmatpush.bf16.msra.mxu2 %v786_v30 }
  0x32   : > { %402 = vmatmul.bf16.vlgmr.msra.gmra.mxu0 %v342_v15 }
  0x34   : > { %567 = vmatpush.bf16.msra.mxu2 %v785_v31 }
  0xaf   : > { %v403_v25 = vpop.f32.mrf.mxu0 }
  0xb0   : > { %v404_v26 = vadd.f32 %v834_v24, %v403_v25 }
  0xb2   : > { %v407_v27 = vmax.f32 %v404_v26, 0.0 }
  0xb4   : > { %v425_v28 = vpack.c.bf16 %v407_v27, %v407_v27 }
  0xb6   : > { %485 = vmatmul.bf16.vlgmr.msra.gmra.mxu1 %v425_v28 }
  0xb7   : > { %v405_v29 = vpop.f32.mrf.mxu0 }
 0x133   : > { %v486_v33 = vpop.f32.mrf.mxu1 }
 0x134   : > { %v487_v34 = vadd.f32 %v835_v32, %v486_v33 }
 0x136   : > { %v490_v35 = vmax.f32 %v487_v34, 0.0 }
 0x138   : > { %v508_v36 = vpack.c.bf16 %v490_v35, %v490_v35 }
 0x13a   : > { %568 = vmatmul.bf16.vlgmr.msra.gmra.mxu2 %v508_v36 }
 0x13b   : > { %v488_v37 = vpop.f32.mrf.mxu1 }
 0x1bd   : > { %v569_v39 = vpop.f32.mrf.mxu2 }
 0x1be   : > { %v570_v40 = vadd.f32 %v836_v38, %v569_v39 }
 0x1c0   : > { %573 = vst [vmem:[%s323_s12] sm:$0xff] %v570_v40 }
 0x1c5   : > { %v571_v41 = vpop.f32.mrf.mxu2 }
 0x1c6 PF: > { %s19_s24 = sadd.s32 1, %s941_s24  }
 0x1c7   : > { %p16_p7 = scmp.ge.s32.totalorder %s19_s24, 4  }
 0x1c9   :  { %18 = sbr.rel (!%p16_p7) target bundleno = 2 (0x2), region = 91 }
 0x1ce   :  { %593 = vsyncpa [#allocation3], 1 }
 0x1cf   :  { %595 = vsyncpa [#allocation3 + $0x1], 1 }
 0x1d0   :  { %596 = vsyncpa [#allocation5], 1 }

</bundles_post_ra>
